<compile_context>
chip_gen: v7x
topology: tpu7x:2x2x1
jax: 0.10.0
libtpu: 0.0.40
codegen_flags: <defaults>
</compile_context>

<pallas_src>
import functools

import jax
import jax.numpy as jnp
from jax.experimental import pallas as pl
from jax.experimental.pallas import tpu as pltpu

HIDDEN = 256
HEAD_PAD = 128   # packed head width: out_dim probs + 1 value + zero padding


def actor_critic_kernel(x_ref, w1_ref, b1_ref, w2_ref, b2_ref, wh_ref, bh_ref,
                        out_ref, *, out_dim):
    # x arrives at native width in f32; cast to bf16 in-kernel (VPU slot is
    # idle under the MXU/HBM pipe) instead of a wrapper-side pad+convert pass.
    x = x_ref[...].astype(jnp.bfloat16)

    # fc1 + relu (bf16 operands, f32 MXU accumulation)
    h1 = jnp.dot(x, w1_ref[...], preferred_element_type=jnp.float32) + b1_ref[...]
    h1 = jnp.maximum(h1, 0.0).astype(jnp.bfloat16)
    # fc2 + relu
    h2 = jnp.dot(h1, w2_ref[...], preferred_element_type=jnp.float32) + b2_ref[...]
    h2 = jnp.maximum(h2, 0.0).astype(jnp.bfloat16)
    # fused actor+critic head: one lane-dense [tb, 128] matmul
    logits = jnp.dot(h2, wh_ref[...], preferred_element_type=jnp.float32) + bh_ref[...]

    # softmax restricted to the first out_dim lanes (actor logits)
    lane = jax.lax.broadcasted_iota(jnp.int32, logits.shape, 1)
    is_prob = lane < out_dim
    masked = jnp.where(is_prob, logits, -jnp.inf)
    m = jnp.max(masked, axis=-1, keepdims=True)
    e = jnp.exp(masked - m)                        # masked lanes -> exp(-inf) = 0
    denom = jnp.sum(e, axis=-1, keepdims=True)
    probs = e / denom                              # exact normalization

    # packed store: lanes [0, out_dim) = probs, lane out_dim = critic value,
    # remaining lanes carry the zero-padded head output (exactly 0).
    out_ref[...] = jnp.where(is_prob, probs, logits).astype(out_ref.dtype)


def pack_params(params_f32, input_dim, out_dim):
    """Pack f32 [in, out] weights into the kernel layout (bf16 weights, f32 bias)."""
    w1, b1, w2, b2, wa, ba, wc, bc = params_f32
    assert out_dim + 1 <= HEAD_PAD, (
        f"packed head width {HEAD_PAD} too small for out_dim={out_dim} (+1 value lane)")
    assert w1.shape[0] == input_dim
    # fused head: [wa | wc | zeros] -> [HIDDEN, HEAD_PAD]
    wh = jnp.zeros((HIDDEN, HEAD_PAD), jnp.float32)
    wh = wh.at[:, :out_dim].set(wa).at[:, out_dim:out_dim + 1].set(wc)
    bh = jnp.zeros((1, HEAD_PAD), jnp.float32)
    bh = bh.at[:, :out_dim].set(ba).at[:, out_dim:out_dim + 1].set(bc)
    return (w1.astype(jnp.bfloat16), b1,
            w2.astype(jnp.bfloat16), b2,
            wh.astype(jnp.bfloat16), bh)


def _batch_tile(B, max_tb=512):
    """Batch tile: 16-row aligned (bf16 sublane pack), right-sized for small B,
    capped at max_tb, and split into >= 2 programs for B >= 256 so both of
    v7x's TensorCores get work."""
    n_steps = pl.cdiv(B, max_tb)
    if n_steps == 1 and B >= 256:
        n_steps = 2
    return max(16, pl.cdiv(pl.cdiv(B, n_steps), 16) * 16)


def actor_critic_forward(x, packed, out_dim, max_tb=512):
    """x: [B, input_dim] f32.  Returns (action_probs [B, out_dim], state_value [B, 1])."""
    w1, b1, w2, b2, wh, bh = packed
    B, in_dim = x.shape
    head_pad = wh.shape[1]

    tb = _batch_tile(B, max_tb)
    grid = pl.cdiv(B, tb)
    b_pad = grid * tb
    # Only the batch axis is padded (rows only, f32, no K pad / no dtype cast).
    x_p = x if b_pad == B else jnp.pad(x, ((0, b_pad - B), (0, 0)))

    # VMEM budget: double-buffered x + out tiles, (default) double-buffered
    # grid-invariant weights, plus headroom for intermediates/compiler scratch.
    weight_bytes = int((w1.size + w2.size + wh.size) * 2
                       + (b1.size + b2.size + bh.size) * 4)
    tile_bytes = 2 * tb * in_dim * 4 + 2 * tb * head_pad * 2
    vmem_limit = int(min(100 << 20,
                         max(2 * (tile_bytes + 2 * weight_bytes) + (4 << 20),
                             16 << 20)))

    flops = 2 * B * (in_dim * HIDDEN + HIDDEN * HIDDEN + HIDDEN * head_pad)
    bytes_accessed = B * in_dim * 4 + weight_bytes + b_pad * head_pad * 2
    cost = pl.CostEstimate(flops=int(flops),
                           transcendentals=int(b_pad * head_pad),
                           bytes_accessed=int(bytes_accessed))

    kernel = functools.partial(actor_critic_kernel, out_dim=out_dim)
    # weights: full-array blocks, index_map pinned to (0, 0) -> VMEM-resident
    resident = lambda a: pl.BlockSpec(a.shape, lambda i: (0,) * a.ndim)

    packed_out = pl.pallas_call(
        kernel,
        out_shape=jax.ShapeDtypeStruct((b_pad, head_pad), jnp.bfloat16),
        grid=(grid,),
        in_specs=[pl.BlockSpec((tb, in_dim), lambda i: (i, 0)),
                  resident(w1), resident(b1),
                  resident(w2), resident(b2),
                  resident(wh), resident(bh)],
        out_specs=pl.BlockSpec((tb, head_pad), lambda i: (i, 0)),
        compiler_params=pltpu.CompilerParams(
            dimension_semantics=("parallel",),
            vmem_limit_bytes=vmem_limit),
        cost_estimate=cost,
    )(x_p, w1, b1, w2, b2, wh, bh)

    probs = packed_out[:B, :out_dim].astype(jnp.float32)
    value = packed_out[:B, out_dim:out_dim + 1].astype(jnp.float32)
    return probs, value


def init_params(key, input_dim, output_dim, hidden=HIDDEN):
    """Deterministic synthetic parameters. Weights stored as [in, out] (pre-transposed)."""
    ks = jax.random.split(key, 8)

    def lin(kw, kb, fan_in, fan_out):
        bound = 1.0 / jnp.sqrt(fan_in)
        w = jax.random.uniform(kw, (fan_in, fan_out), jnp.float32, -bound, bound)
        b = jax.random.uniform(kb, (1, fan_out), jnp.float32, -bound, bound)
        return w, b

    w1, b1 = lin(ks[0], ks[1], input_dim, hidden)
    w2, b2 = lin(ks[2], ks[3], hidden, hidden)
    wa, ba = lin(ks[4], ks[5], hidden, output_dim)
    wc, bc = lin(ks[6], ks[7], hidden, 1)
    return (w1, b1, w2, b2, wa, ba, wc, bc)


def reference_forward(x, params_f32):
    """Pure-JAX reference with the same bf16 weight / f32 accumulation numerics."""
    w1, b1, w2, b2, wa, ba, wc, bc = params_f32
    bf = jnp.bfloat16
    xb = x.astype(bf)
    h1 = jnp.maximum(jnp.dot(xb, w1.astype(bf), preferred_element_type=jnp.float32) + b1, 0.0).astype(bf)
    h2 = jnp.maximum(jnp.dot(h1, w2.astype(bf), preferred_element_type=jnp.float32) + b2, 0.0).astype(bf)
    logits = jnp.dot(h2, wa.astype(bf), preferred_element_type=jnp.float32) + ba
    probs = jax.nn.softmax(logits, axis=-1)
    value = jnp.dot(h2, wc.astype(bf), preferred_element_type=jnp.float32) + bc
    return probs, value


if __name__ == "__main__":
    key = jax.random.PRNGKey(0)
    k_x, k_p, k_x2 = jax.random.split(key, 3)

    batch, input_dim, output_dim = 2, 32, 8
    x = jax.random.normal(k_x, (batch, input_dim), jnp.float32)
    params = init_params(k_p, input_dim, output_dim)
    packed = pack_params(params, input_dim, output_dim)

    probs, value = actor_critic_forward(x, packed, output_dim)
    jax.block_until_ready((probs, value))

    ref_probs, ref_value = reference_forward(x, params)
    assert probs.shape == (batch, output_dim)
    assert value.shape == (batch, 1)
    # Tolerances account for the bf16 packed-output store (~2^-9 relative
    # rounding) on top of the bf16-weight / f32-accumulate numerics.
    assert jnp.allclose(probs, ref_probs, atol=5e-3, rtol=1e-2), "probs mismatch"
    assert jnp.allclose(value, ref_value, atol=8e-3, rtol=1e-2), "value mismatch"
    assert jnp.allclose(jnp.sum(probs, axis=-1), 1.0, atol=1e-2), "probs not normalized"

    # Larger batch exercising the multi-program / ragged-tile path (grid >= 2).
    batch2 = 300
    x2 = jax.random.normal(k_x2, (batch2, input_dim), jnp.float32)
    probs2, value2 = actor_critic_forward(x2, packed, output_dim)
    jax.block_until_ready((probs2, value2))
    ref_probs2, ref_value2 = reference_forward(x2, params)
    assert probs2.shape == (batch2, output_dim)
    assert value2.shape == (batch2, 1)
    assert jnp.allclose(probs2, ref_probs2, atol=5e-3, rtol=1e-2), "probs2 mismatch"
    assert jnp.allclose(value2, ref_value2, atol=8e-3, rtol=1e-2), "value2 mismatch"

    print("KERNEL_OK")
</pallas_src>

<mosaic_0001>
module attributes {stable_mosaic.version = 11 : i64} {
  func.func @actor_critic_kernel(%arg0: i32, %arg1: memref<16x32xf32, #tpu.memory_space<vmem>>, %arg2: memref<32x256xbf16, #tpu.memory_space<vmem>>, %arg3: memref<1x256xf32, #tpu.memory_space<vmem>>, %arg4: memref<256x256xbf16, #tpu.memory_space<vmem>>, %arg5: memref<1x256xf32, #tpu.memory_space<vmem>>, %arg6: memref<256x128xbf16, #tpu.memory_space<vmem>>, %arg7: memref<1x128xf32, #tpu.memory_space<vmem>>, %arg8: memref<16x128xbf16, #tpu.memory_space<vmem>>) attributes {dimension_semantics = [#tpu.dimension_semantics<parallel>], iteration_bounds = array<i64: 1>, scalar_prefetch = 0 : i64, scratch_operands = 0 : i64, tpu.core_type = #tpu.core_type<tc>, window_params = [{transform_indices = @transform_0, window_bounds = array<i64: 16, 32>}, {pipeline_mode = #tpu.pipeline_mode<synchronous>, transform_indices = @transform_1, window_bounds = array<i64: 32, 256>}, {pipeline_mode = #tpu.pipeline_mode<synchronous>, transform_indices = @transform_2, window_bounds = array<i64: 1, 256>}, {pipeline_mode = #tpu.pipeline_mode<synchronous>, transform_indices = @transform_3, window_bounds = array<i64: 256, 256>}, {pipeline_mode = #tpu.pipeline_mode<synchronous>, transform_indices = @transform_4, window_bounds = array<i64: 1, 256>}, {pipeline_mode = #tpu.pipeline_mode<synchronous>, transform_indices = @transform_5, window_bounds = array<i64: 256, 128>}, {pipeline_mode = #tpu.pipeline_mode<synchronous>, transform_indices = @transform_6, window_bounds = array<i64: 1, 128>}, {transform_indices = @transform_7, window_bounds = array<i64: 16, 128>}]} {
    %c0 = arith.constant 0 : index
    %c0_0 = arith.constant 0 : index
    %0 = vector.load %arg1[%c0, %c0_0] : memref<16x32xf32, #tpu.memory_space<vmem>>, vector<16x32xf32>
    %1 = arith.truncf %0 : vector<16x32xf32> to vector<16x32xbf16>
    %c0_1 = arith.constant 0 : index
    %c0_2 = arith.constant 0 : index
    %2 = vector.load %arg2[%c0_1, %c0_2] : memref<32x256xbf16, #tpu.memory_space<vmem>>, vector<32x256xbf16>
    %cst = arith.constant dense<0.000000e+00> : vector<16x256xf32>
    %3 = tpu.matmul %1, %2, %cst {dimension_numbers = #tpu.dot_dimension_numbers<[1], [0], [0], [1], [0, 0, 1, 1], [], []>} : vector<16x32xbf16>, vector<32x256xbf16>, vector<16x256xf32> -> vector<16x256xf32>
    %c0_3 = arith.constant 0 : index
    %c0_4 = arith.constant 0 : index
    %4 = vector.load %arg3[%c0_3, %c0_4] : memref<1x256xf32, #tpu.memory_space<vmem>>, vector<1x256xf32>
    %5 = vector.broadcast %4 : vector<1x256xf32> to vector<16x256xf32>
    %6 = arith.addf %3, %5 : vector<16x256xf32>
    %cst_5 = arith.constant 0.000000e+00 : f32
    %7 = vector.broadcast %cst_5 : f32 to vector<16x256xf32>
    %8 = arith.maximumf %6, %7 : vector<16x256xf32>
    %9 = arith.truncf %8 : vector<16x256xf32> to vector<16x256xbf16>
    %c0_6 = arith.constant 0 : index
    %c0_7 = arith.constant 0 : index
    %10 = vector.load %arg4[%c0_6, %c0_7] : memref<256x256xbf16, #tpu.memory_space<vmem>>, vector<256x256xbf16>
    %cst_8 = arith.constant dense<0.000000e+00> : vector<16x256xf32>
    %11 = tpu.matmul %9, %10, %cst_8 {dimension_numbers = #tpu.dot_dimension_numbers<[1], [0], [0], [1], [0, 0, 1, 1], [], []>} : vector<16x256xbf16>, vector<256x256xbf16>, vector<16x256xf32> -> vector<16x256xf32>
    %c0_9 = arith.constant 0 : index
    %c0_10 = arith.constant 0 : index
    %12 = vector.load %arg5[%c0_9, %c0_10] : memref<1x256xf32, #tpu.memory_space<vmem>>, vector<1x256xf32>
    %13 = vector.broadcast %12 : vector<1x256xf32> to vector<16x256xf32>
    %14 = arith.addf %11, %13 : vector<16x256xf32>
    %cst_11 = arith.constant 0.000000e+00 : f32
    %15 = vector.broadcast %cst_11 : f32 to vector<16x256xf32>
    %16 = arith.maximumf %14, %15 : vector<16x256xf32>
    %17 = arith.truncf %16 : vector<16x256xf32> to vector<16x256xbf16>
    %c0_12 = arith.constant 0 : index
    %c0_13 = arith.constant 0 : index
    %18 = vector.load %arg6[%c0_12, %c0_13] : memref<256x128xbf16, #tpu.memory_space<vmem>>, vector<256x128xbf16>
    %cst_14 = arith.constant dense<0.000000e+00> : vector<16x128xf32>
    %19 = tpu.matmul %17, %18, %cst_14 {dimension_numbers = #tpu.dot_dimension_numbers<[1], [0], [0], [1], [0, 0, 1, 1], [], []>} : vector<16x256xbf16>, vector<256x128xbf16>, vector<16x128xf32> -> vector<16x128xf32>
    %c0_15 = arith.constant 0 : index
    %c0_16 = arith.constant 0 : index
    %20 = vector.load %arg7[%c0_15, %c0_16] : memref<1x128xf32, #tpu.memory_space<vmem>>, vector<1x128xf32>
    %21 = vector.broadcast %20 : vector<1x128xf32> to vector<16x128xf32>
    %22 = arith.addf %19, %21 : vector<16x128xf32>
    %23 = tpu.iota {dimensions = array<i32: 1>} : vector<16x128xi32>
    %c8_i32 = arith.constant 8 : i32
    %24 = vector.broadcast %c8_i32 : i32 to vector<16x128xi32>
    %25 = arith.cmpi slt, %23, %24 : vector<16x128xi32>
    %cst_17 = arith.constant 0xFF800000 : f32
    %26 = vector.broadcast %cst_17 : f32 to vector<16x128xf32>
    %27 = arith.select %25, %22, %26 : vector<16x128xi1>, vector<16x128xf32>
    %cst_18 = arith.constant dense<0xFF800000> : vector<16xf32>
    %28 = vector.multi_reduction <maximumf>, %27, %cst_18 [1] : vector<16x128xf32> to vector<16xf32>
    %29 = vector.shape_cast %28 : vector<16xf32> to vector<16x1xf32>
    %30 = vector.broadcast %29 : vector<16x1xf32> to vector<16x128xf32>
    %31 = arith.subf %27, %30 : vector<16x128xf32>
    %32 = math.exp %31 : vector<16x128xf32>
    %cst_19 = arith.constant dense<0.000000e+00> : vector<16xf32>
    %33 = vector.multi_reduction <add>, %32, %cst_19 [1] : vector<16x128xf32> to vector<16xf32>
    %34 = vector.shape_cast %33 : vector<16xf32> to vector<16x1xf32>
    %35 = vector.broadcast %34 : vector<16x1xf32> to vector<16x128xf32>
    %36 = arith.divf %32, %35 : vector<16x128xf32>
    %37 = arith.select %25, %36, %22 : vector<16x128xi1>, vector<16x128xf32>
    %38 = arith.truncf %37 : vector<16x128xf32> to vector<16x128xbf16>
    %c0_20 = arith.constant 0 : index
    %c0_21 = arith.constant 0 : index
    %39 = vector.load %arg8[%c0_20, %c0_21] : memref<16x128xbf16, #tpu.memory_space<vmem>>, vector<16x128xbf16>
    tpu.vector_store %arg8[%c0_20, %c0_21], %38 {strides = array<i32>} : memref<16x128xbf16, #tpu.memory_space<vmem>>, vector<16x128xbf16>,
    return
  }
  func.func @transform_0(%arg0: i32) -> (i32, i32) {
    %c0_i32 = arith.constant 0 : i32
    %c0_i32_0 = arith.constant 0 : i32
    return %arg0, %c0_i32 : i32, i32
  }
  func.func @transform_1(%arg0: i32) -> (i32, i32) {
    %c0_i32 = arith.constant 0 : i32
    %c0_i32_0 = arith.constant 0 : i32
    %c0_i32_1 = arith.constant 0 : i32
    return %c0_i32, %c0_i32_0 : i32, i32
  }
  func.func @transform_2(%arg0: i32) -> (i32, i32) {
    %c0_i32 = arith.constant 0 : i32
    %c0_i32_0 = arith.constant 0 : i32
    %c0_i32_1 = arith.constant 0 : i32
    return %c0_i32, %c0_i32_0 : i32, i32
  }
  func.func @transform_3(%arg0: i32) -> (i32, i32) {
    %c0_i32 = arith.constant 0 : i32
    %c0_i32_0 = arith.constant 0 : i32
    %c0_i32_1 = arith.constant 0 : i32
    return %c0_i32, %c0_i32_0 : i32, i32
  }
  func.func @transform_4(%arg0: i32) -> (i32, i32) {
    %c0_i32 = arith.constant 0 : i32
    %c0_i32_0 = arith.constant 0 : i32
    %c0_i32_1 = arith.constant 0 : i32
    return %c0_i32, %c0_i32_0 : i32, i32
  }
  func.func @transform_5(%arg0: i32) -> (i32, i32) {
    %c0_i32 = arith.constant 0 : i32
    %c0_i32_0 = arith.constant 0 : i32
    %c0_i32_1 = arith.constant 0 : i32
    return %c0_i32, %c0_i32_0 : i32, i32
  }
  func.func @transform_6(%arg0: i32) -> (i32, i32) {
    %c0_i32 = arith.constant 0 : i32
    %c0_i32_0 = arith.constant 0 : i32
    %c0_i32_1 = arith.constant 0 : i32
    return %c0_i32, %c0_i32_0 : i32, i32
  }
  func.func @transform_7(%arg0: i32) -> (i32, i32) {
    %c0_i32 = arith.constant 0 : i32
    %c0_i32_0 = arith.constant 0 : i32
    return %arg0, %c0_i32 : i32, i32
  }
}

</mosaic_0001>

<bundles_post_ra>
// kernel: tpu_custom_call.1
= control target key start
LH: loop header
LB: loop body
LE: loop exit
PB: predicated region body
PF: predicated region fallthrough
CT: control target
= control target key end

     0   :  { %12 = vsyncpa [#allocation3], 0  ;;  %s1101_s0 = inlined_call_operand.hbm [shape: f32[16,32], index: 0, kind: input, shape index: {}]   ;;  %s1102_s1 = inlined_call_operand.hbm [shape: bf16[32,256], index: 1, kind: input, shape index: {}]   ;;  %s1103_s2 = inlined_call_operand.vmem [shape: f32[1,256], index: 2, kind: input, shape index: {}]   ;;  %s1104_s3 = inlined_call_operand.hbm [shape: bf16[256,256], index: 3, kind: input, shape index: {}]   ;;  %s1105_s4 = inlined_call_operand.vmem [shape: f32[1,256], index: 4, kind: input, shape index: {}]   ;;  %s1106_s5 = inlined_call_operand.hbm [shape: bf16[256,128], index: 5, kind: input, shape index: {}]   ;;  %s1107_s6 = inlined_call_operand.vmem [shape: f32[1,128], index: 6, kind: input, shape index: {}]   ;;  %s1108_s7 = inlined_call_operand.hbm [shape: bf16[16,128], index: 7, kind: output, shape index: {}]  }
   0x1   :  { %13 = vsyncpa [#allocation6], 0 }
   0x2   :  { %14 = vsyncpa [#allocation9], 0 }
   0x3   :  { %15 = vsyncpa [#allocation4], 0  ;;  %s949_s24 = smov [#allocation5]   ;;  %s950_s26 = smov [#allocation2]  }
   0x4   :  { %s33_s25 = sshll.u32 %s949_s24, 4  ;;  %s21_s27 = sshll.u32 %s950_s26, 4  ;;  %s34_s25 = int_to_ptr.vmem [resolvable:$true] %s33_s25  ;;  %s999_s27 = int_to_ptr.vmem [resolvable:$true] %s21_s27 }
   0x5   :  { %s831_s30 = scalar_lea.hbm %s1102_s1, 512 }
   0x6   :  { %p832_p0 = scmp.ne.s32.totalorder %s1102_s1, %s831_s30  ;;  %p835_p1 = scmp.lt.u32.totalorder %s831_s30, %s1102_s1 }
   0x8   :  { %p837_p2 = pnand %p835_p1, %p832_p0 }
   0xa   :  { %840 = shalt.err (!%p837_p2)
}
   0xb   :  { %s841_s12 = scalar_lea.vmem %s34_s25, 512  ;;  %p846_p4 = scmp.lt.s32.totalorder %s34_s25, %s34_s25 }
   0xc   :  { %p842_p3 = scmp.ne.s32.totalorder %s34_s25, %s841_s12  ;;  %p847_p5 = scmp.lt.s32.totalorder %s841_s12, %s841_s12 }
   0xe   :  { %p848_p6 = por %p847_p5, %p846_p4 }
  0x10   :  { %p849_p7 = pnand %p848_p6, %p842_p3 }
  0x12   :  { %852 = shalt.err (!%p849_p7)
}
  0x13   :  { %s951_s13 = smov 128   ;;  %s952_s14 = smov 8  }
  0x14   :  { %39 = dma.hbm_to_vmem [thread:$0]  %s1102_s1, 512, %s34_s25, [#allocation6], %s951_s13, %s951_s13, %s952_s14  }
  0x15   :  { %s853_s19 = scalar_lea.hbm %s1101_s0, 256 }
  0x16   :  { %p854_p8 = scmp.ne.s32.totalorder %s1101_s0, %s853_s19  ;;  %p857_p9 = scmp.lt.u32.totalorder %s853_s19, %s1101_s0 }
  0x18   :  { %p859_p10 = pnand %p857_p9, %p854_p8 }
  0x1a   :  { %862 = shalt.err (!%p859_p10)
}
  0x1b   :  { %s863_s24 = scalar_lea.vmem %s999_s27, 256  ;;  %p868_p12 = scmp.lt.s32.totalorder %s999_s27, %s999_s27 }
  0x1c   :  { %p864_p11 = scmp.ne.s32.totalorder %s999_s27, %s863_s24  ;;  %p869_p13 = scmp.lt.s32.totalorder %s863_s24, %s863_s24 }
  0x1e   :  { %p870_p0 = por %p869_p13, %p868_p12 }
  0x20   :  { %p871_p1 = pnand %p870_p0, %p864_p11 }
  0x22   :  { %874 = shalt.err (!%p871_p1)
}
  0x23   :  { %27 = dma.hbm_to_vmem [thread:$0]  %s1101_s0, 256, %s999_s27, [#allocation3], %s951_s13, %s951_s13, %s952_s14  }
  0x24   :  { %s953_s26 = smov [#allocation7]   ;;  %s954_s29 = smov [#allocation8]  }
  0x25   :  { %s47_s28 = sshll.u32 %s953_s26, 4  ;;  %s61_s30 = sshll.u32 %s954_s29, 4  ;;  %s48_s28 = int_to_ptr.vmem [resolvable:$true] %s47_s28  ;;  %s1036_s30 = int_to_ptr.vmem [resolvable:$true] %s61_s30 }
  0x26   :  { %s875_s10 = scalar_lea.hbm %s1104_s3, 4096 }
  0x27   :  { %p876_p2 = scmp.ne.s32.totalorder %s1104_s3, %s875_s10  ;;  %p879_p3 = scmp.lt.u32.totalorder %s875_s10, %s1104_s3 }
  0x29   :  { %p881_p4 = pnand %p879_p3, %p876_p2 }
  0x2b   :  { %884 = shalt.err (!%p881_p4)
}
  0x2c   :  { %s885_s0 = scalar_lea.vmem %s48_s28, 4096  ;;  %p890_p6 = scmp.lt.s32.totalorder %s48_s28, %s48_s28 }
  0x2d   :  { %p886_p5 = scmp.ne.s32.totalorder %s48_s28, %s885_s0  ;;  %p891_p7 = scmp.lt.s32.totalorder %s885_s0, %s885_s0 }
  0x2f   :  { %p892_p8 = por %p891_p7, %p890_p6 }
  0x31   :  { %p893_p9 = pnand %p892_p8, %p886_p5 }
  0x33   :  { %896 = shalt.err (!%p893_p9)
}
  0x34   :  { %53 = dma.hbm_to_vmem [thread:$0]  %s1104_s3, 4096, %s48_s28, [#allocation6], %s951_s13, %s951_s13, %s952_s14  }
  0x35   :  { %s897_s20 = scalar_lea.hbm %s1106_s5, 2048 }
  0x36   :  { %p898_p10 = scmp.ne.s32.totalorder %s1106_s5, %s897_s20  ;;  %p901_p11 = scmp.lt.u32.totalorder %s897_s20, %s1106_s5 }
  0x38   :  { %p903_p12 = pnand %p901_p11, %p898_p10 }
  0x3a   :  { %906 = shalt.err (!%p903_p12)
}
  0x3b   :  { %s907_s1 = scalar_lea.vmem %s1036_s30, 2048  ;;  %p912_p0 = scmp.lt.s32.totalorder %s1036_s30, %s1036_s30 }
  0x3c   :  { %p908_p13 = scmp.ne.s32.totalorder %s1036_s30, %s907_s1  ;;  %p913_p1 = scmp.lt.s32.totalorder %s907_s1, %s907_s1 }
  0x3e   :  { %p914_p2 = por %p913_p1, %p912_p0 }
  0x40   :  { %p915_p3 = pnand %p914_p2, %p908_p13 }
  0x42   :  { %918 = shalt.err (!%p915_p3)
}
  0x43   :  { %s955_s3 = smov 64   ;;  %s956_s13 = smov 4  }
  0x44   :  { %67 = dma.hbm_to_vmem [thread:$0]  %s1106_s5, 2048, %s1036_s30, [#allocation9], %s955_s3, %s955_s3, %s956_s13  }
  0x45   :  { %941 = dma.done.wait [#allocation3], 256  }
  0x46   :  { %942 = vsyncadd [#allocation3], 4294967040 }
  0x47   :  { %943 = dma.done.wait [#allocation6], 4608  }
  0x48   :  { %944 = vsyncadd [#allocation6], 4294962688 }
  0x49   :  { %945 = dma.done.wait [#allocation9], 2048  }
  0x4a   :  { %946 = vsyncadd [#allocation9], 4294965248  ;;  %v957_v0 = vmov 0   ;;  %v753_v1 = vld [vmem:[#allocation5 + $0x4] ss:$8 sps:$4 sm:$0xff]   ;;  %v83_v5 = vld [vmem:[#allocation2] sm:$0xff]  ;;  %v92_v51 = vlaneseq }
  0x4b   :  { %158 = vmatprep.mubr.bf16.mxu0 %v957_v0  ;;  %v755_v2 = vld [vmem:[#allocation5] ss:$8 sps:$4 sm:$0xff]   ;;  %126 = vmatprep.subr.bf16.mxu0 %v753_v1  ;;  %v756_v3 = vld [vmem:[#allocation5 + $0x14] ss:$8 sps:$4 sm:$0xff]   ;;  %v758_v4 = vld [vmem:[#allocation5 + $0x10] ss:$8 sps:$4 sm:$0xff]  }
  0x4c   :  { %127 = vmatpush1.bf16.msra.mxu0 %v755_v2  ;;  %v84_v6 = vld [vmem:[#allocation2 + $0x8] sm:$0xff]  ;;  %v759_v7 = vld [vmem:[#allocation7 + $0x4] ss:$8 sps:$4 sm:$0xff]   ;;  %v761_v8 = vld [vmem:[#allocation7] ss:$8 sps:$4 sm:$0xff]   ;;  %vm122_vm0 = vcmask 261120  }
  0x4d   :  { %128 = vmatprep.subr.bf16.mxu0 %v756_v3  ;;  %v762_v9 = vld [vmem:[#allocation7 + $0x14] ss:$8 sps:$4 sm:$0xff]   ;;  %v85_v10 = vpack.c.bf16 %v84_v6, %v83_v5  ;;  %379 = vmatprep.subr.bf16.mxu1 %v759_v7  ;;  %v764_v11 = vld [vmem:[#allocation7 + $0x10] ss:$8 sps:$4 sm:$0xff]   ;;  %v765_v12 = vld [vmem:[#allocation7 + $0x24] ss:$8 sps:$4 sm:$0xff]  }
  0x4e   :  { %380 = vmatpush1.bf16.msra.mxu1 %v761_v8  ;;  %v767_v13 = vld [vmem:[#allocation7 + $0x20] ss:$8 sps:$4 sm:$0xff]   ;;  %v768_v14 = vld [vmem:[#allocation7 + $0x34] ss:$8 sps:$4 sm:$0xff]   ;;  %v770_v15 = vld [vmem:[#allocation7 + $0x30] ss:$8 sps:$4 sm:$0xff]  }
  0x4f   :  { %381 = vmatprep.subr.bf16.mxu1 %v762_v9  ;;  %v771_v16 = vld [vmem:[#allocation7 + $0x44] ss:$8 sps:$4 sm:$0xff]   ;;  %v773_v17 = vld [vmem:[#allocation7 + $0x40] ss:$8 sps:$4 sm:$0xff]   ;;  %v774_v18 = vld [vmem:[#allocation7 + $0x54] ss:$8 sps:$4 sm:$0xff]  }
  0x50   :  { %129 = vmatpush1.bf16.msra.mxu0 %v758_v4  ;;  %v776_v19 = vld [vmem:[#allocation7 + $0x50] ss:$8 sps:$4 sm:$0xff]   ;;  %v777_v20 = vld [vmem:[#allocation7 + $0x64] ss:$8 sps:$4 sm:$0xff]   ;;  %v779_v21 = vld [vmem:[#allocation7 + $0x60] ss:$8 sps:$4 sm:$0xff]  }
  0x51   :  { %v780_v22 = vld [vmem:[#allocation7 + $0x74] ss:$8 sps:$4 sm:$0xff]   ;;  %v782_v23 = vld [vmem:[#allocation7 + $0x70] ss:$8 sps:$4 sm:$0xff]   ;;  %v783_v24 = vld [vmem:[#allocation7 + $0x84] ss:$8 sps:$4 sm:$0xff]  }
  0x52   :  { %382 = vmatpush1.bf16.msra.mxu1 %v764_v11  ;;  %v785_v25 = vld [vmem:[#allocation7 + $0x80] ss:$8 sps:$4 sm:$0xff]   ;;  %v786_v26 = vld [vmem:[#allocation7 + $0x94] ss:$8 sps:$4 sm:$0xff]   ;;  %v788_v27 = vld [vmem:[#allocation7 + $0x90] ss:$8 sps:$4 sm:$0xff]  }
  0x53   :  { %662 = vmatmul.mubr.msk.bf16.vlgmr.msra.gmra.mrb[0].mxu0 %vm122_vm0, %v85_v10  ;;  %383 = vmatprep.subr.bf16.mxu1 %v765_v12  ;;  %v789_v28 = vld [vmem:[#allocation7 + $0xa4] ss:$8 sps:$4 sm:$0xff]   ;;  %v791_v29 = vld [vmem:[#allocation7 + $0xa0] ss:$8 sps:$4 sm:$0xff]   ;;  %v792_v30 = vld [vmem:[#allocation7 + $0xb4] ss:$8 sps:$4 sm:$0xff]  }
  0x54   :  { %v794_v31 = vld [vmem:[#allocation7 + $0xb0] ss:$8 sps:$4 sm:$0xff]   ;;  %v795_v32 = vld [vmem:[#allocation7 + $0xc4] ss:$8 sps:$4 sm:$0xff]   ;;  %v797_v33 = vld [vmem:[#allocation7 + $0xc0] ss:$8 sps:$4 sm:$0xff]  }
  0x55   :  { %v798_v34 = vld [vmem:[#allocation7 + $0xd4] ss:$8 sps:$4 sm:$0xff]   ;;  %v800_v35 = vld [vmem:[#allocation7 + $0xd0] ss:$8 sps:$4 sm:$0xff]   ;;  %v801_v36 = vld [vmem:[#allocation7 + $0xe4] ss:$8 sps:$4 sm:$0xff]  }
  0x56   :  { %384 = vmatpush1.bf16.msra.mxu1 %v767_v13  ;;  %v803_v37 = vld [vmem:[#allocation7 + $0xe0] ss:$8 sps:$4 sm:$0xff]   ;;  %v804_v38 = vld [vmem:[#allocation7 + $0xf4] ss:$8 sps:$4 sm:$0xff]   ;;  %v806_v39 = vld [vmem:[#allocation7 + $0xf0] ss:$8 sps:$4 sm:$0xff]  }
  0x57   :  { %385 = vmatprep.subr.bf16.mxu1 %v768_v14  ;;  %v807_v40 = vld [vmem:[#allocation8 + $0x40] sm:$0xff]   ;;  %v809_v42 = vld [vmem:[#allocation8 + $0x48] sm:$0xff]   ;;  %v811_v44 = vld [vmem:[#allocation8 + $0x50] sm:$0xff]   ;;  %v93_v52 = vshrl.u32 %v92_v51, 7 }
  0x58   :  { %v808_v41 = vld [vmem:[#allocation8] sm:$0xff]   ;;  %721 = vmatprep.subr.bf16.mxu0 %v807_v40  ;;  %v810_v43 = vld [vmem:[#allocation8 + $0x8] sm:$0xff]   ;;  %v812_v45 = vld [vmem:[#allocation8 + $0x10] sm:$0xff]  }
  0x59   :  { %722 = vmatpush3.bf16.msra.mxu0 %v808_v41  ;;  %v813_v46 = vld [vmem:[#allocation8 + $0x58] sm:$0xff]   ;;  %v815_v48 = vld [vmem:[#allocation8 + $0x60] sm:$0xff]   ;;  %v817_v50 = vld [vmem:[#allocation8 + $0x68] sm:$0xff]   ;;  %v94_v53 = vsub.s32 0, %v93_v52  ;;  %v98_v55 = vsub.s32 1, %v93_v52 }
  0x5a   :  { %386 = vmatpush1.bf16.msra.mxu1 %v770_v15  ;;  %723 = vmatprep.subr.bf16.mxu0 %v809_v42  ;;  %v814_v47 = vld [vmem:[#allocation8 + $0x18] sm:$0xff]   ;;  %v816_v49 = vld [vmem:[#allocation8 + $0x20] sm:$0xff]   ;;  %v90_v54 = vld [vmem:[%s1103_s2] sm:$0x3] }
  0x5b   :  { %387 = vmatprep.subr.bf16.mxu1 %v771_v16  ;;  %v95_v56 = vrot.slane %v90_v54, %v94_v53  ;;  %v99_v57 = vrot.slane %v90_v54, %v98_v55  ;;  %v818_v8 = vld [vmem:[#allocation8 + $0x28] sm:$0xff]   ;;  %v819_v9 = vld [vmem:[#allocation8 + $0x70] sm:$0xff]   ;;  %v821_v11 = vld [vmem:[#allocation8 + $0x78] sm:$0xff]  }
  0x5c   :  { %v820_v10 = vld [vmem:[#allocation8 + $0x30] sm:$0xff]   ;;  %v822_v12 = vld [vmem:[#allocation8 + $0x38] sm:$0xff]  }
  0x5d   :  { %724 = vmatpush3.bf16.msra.mxu0 %v810_v43  ;;  %v207_v13 = vld [vmem:[%s1105_s4] sm:$0x3] }
  0x5e   :  { %388 = vmatpush1.bf16.msra.mxu1 %v773_v17  ;;  %725 = vmatprep.subr.bf16.mxu0 %v811_v44  ;;  %v212_v14 = vrot.slane %v207_v13, %v94_v53  ;;  %v216_v15 = vrot.slane %v207_v13, %v98_v55 }
  0x5f   :  { %389 = vmatprep.subr.bf16.mxu1 %v774_v18 }
  0x61   :  { %726 = vmatpush3.bf16.msra.mxu0 %v812_v45 }
  0x62   :  { %390 = vmatpush1.bf16.msra.mxu1 %v776_v19  ;;  %727 = vmatprep.subr.bf16.mxu0 %v813_v46 }
  0x63   :  { %391 = vmatprep.subr.bf16.mxu1 %v777_v20 }
  0x65   :  { %728 = vmatpush3.bf16.msra.mxu0 %v814_v47 }
  0x66   :  { %392 = vmatpush1.bf16.msra.mxu1 %v779_v21  ;;  %729 = vmatprep.subr.bf16.mxu0 %v815_v48 }
  0x67   :  { %393 = vmatprep.subr.bf16.mxu1 %v780_v22 }
  0x69   :  { %730 = vmatpush3.bf16.msra.mxu0 %v816_v49 }
  0x6a   :  { %394 = vmatpush1.bf16.msra.mxu1 %v782_v23  ;;  %731 = vmatprep.subr.bf16.mxu0 %v817_v50 }
  0x6b   :  { %395 = vmatprep.subr.bf16.mxu1 %v783_v24 }
  0x6d   :  { %732 = vmatpush3.bf16.msra.mxu0 %v818_v8 }
  0x6e   :  { %396 = vmatpush1.bf16.msra.mxu1 %v785_v25  ;;  %733 = vmatprep.subr.bf16.mxu0 %v819_v9 }
  0x6f   :  { %397 = vmatprep.subr.bf16.mxu1 %v786_v26 }
  0x71   :  { %734 = vmatpush3.bf16.msra.mxu0 %v820_v10 }
  0x72   :  { %398 = vmatpush1.bf16.msra.mxu1 %v788_v27  ;;  %735 = vmatprep.subr.bf16.mxu0 %v821_v11 }
  0x73   :  { %399 = vmatprep.subr.bf16.mxu1 %v789_v28 }
  0x75   :  { %736 = vmatpush3.bf16.msra.mxu0 %v822_v12 }
  0x76   :  { %400 = vmatpush1.bf16.msra.mxu1 %v791_v29 }
  0x77   :  { %401 = vmatprep.subr.bf16.mxu1 %v792_v30  ;;  %v605_v30 = vand.u32 127, %v92_v51 }
  0x79   :  { %vm606_vm1 = vcmp.lt.s32.totalorder %v605_v30, 8 }
  0x7a   :  { %402 = vmatpush1.bf16.msra.mxu1 %v794_v31 }
  0x7b   :  { %403 = vmatprep.subr.bf16.mxu1 %v795_v32 }
  0x7e   :  { %404 = vmatpush1.bf16.msra.mxu1 %v797_v33  ;;  %v695_v33 = vld [vmem:[%s1107_s6] ss:$0 sm:$0xff]  ;;  %s958_s6 = smov [#allocation10]  }
  0x7f   :  { %405 = vmatprep.subr.bf16.mxu1 %v798_v34  ;;  %s644_s30 = sshll.u32 %s958_s6, 4  ;;  %s645_s30 = int_to_ptr.vmem [resolvable:$true] %s644_s30 }
  0x80   :  { %s919_s8 = scalar_lea.vmem %s645_s30, 128  ;;  %p924_p5 = scmp.lt.s32.totalorder %s645_s30, %s645_s30 }
  0x81   :  { %p920_p4 = scmp.ne.s32.totalorder %s645_s30, %s919_s8  ;;  %p925_p6 = scmp.lt.s32.totalorder %s919_s8, %s919_s8 }
  0x82   :  { %406 = vmatpush1.bf16.msra.mxu1 %v800_v35 }
  0x83   :  { %407 = vmatprep.subr.bf16.mxu1 %v801_v36  ;;  %p926_p7 = por %p925_p6, %p924_p5 }
  0x85   :  { %p927_p8 = pnand %p926_p7, %p920_p4 }
  0x86   :  { %408 = vmatpush1.bf16.msra.mxu1 %v803_v37 }
  0x87   :  { %409 = vmatprep.subr.bf16.mxu1 %v804_v38 }
  0x8a   :  { %410 = vmatpush1.bf16.msra.mxu1 %v806_v39 }
 0x126   :  { %v160_v58 = vpop.f32.mrb[0].mxu0 }
 0x127   :  { %v161_v59 = vadd.f32 %v160_v58, %v95_v56  ;;  %v162_v60 = vpop.f32.mrb[1].mxu0 }
 0x128   :  { %v163_v61 = vadd.f32 %v162_v60, %v99_v57  ;;  %v164_v62 = vpop.f32.mrb[2].mxu0 }
 0x129   :  { %v165_v63 = vadd.f32 %v164_v62, %v95_v56  ;;  %v166_v0 = vpop.f32.mrb[3].mxu0  ;;  %v169_v2 = vmax.f32 %v161_v59, 0.0 }
 0x12a   :  { %v167_v1 = vadd.f32 %v166_v0, %v99_v57  ;;  %v170_v4 = vmax.f32 %v163_v61, 0.0 }
 0x12b   :  { %v171_v3 = vmax.f32 %v165_v63, 0.0 }
 0x12c   :  { %v172_v5 = vmax.f32 %v167_v1, 0.0 }
 0x12d   :  { %v173_v6 = vpack.c.bf16 %v171_v3, %v169_v2 }
 0x12e   :  { %v174_v7 = vpack.c.bf16 %v172_v5, %v170_v4 }
 0x130   :  { %411 = vmatprep.mubr.bf16.mxu1 %v174_v7 }
 0x131   :  { %412 = vmatmul.mubr.bf16.vlgmr.msra.gmra.mrb[0].mxu1 %v173_v6 }
 0x204   :  { %v413_v16 = vpop.f32.mrb[0].mxu1 }
 0x205   :  { %v414_v17 = vadd.f32 %v413_v16, %v212_v14  ;;  %v415_v18 = vpop.f32.mrb[1].mxu1 }
 0x206   :  { %v416_v19 = vadd.f32 %v415_v18, %v216_v15  ;;  %v417_v20 = vpop.f32.mrb[2].mxu1 }
 0x207   :  { %v418_v21 = vadd.f32 %v417_v20, %v212_v14  ;;  %v419_v22 = vpop.f32.mrb[3].mxu1  ;;  %v422_v24 = vmax.f32 %v414_v17, 0.0 }
 0x208   :  { %v420_v23 = vadd.f32 %v419_v22, %v216_v15  ;;  %v423_v26 = vmax.f32 %v416_v19, 0.0 }
 0x209   :  { %v424_v25 = vmax.f32 %v418_v21, 0.0 }
 0x20a   :  { %v425_v27 = vmax.f32 %v420_v23, 0.0 }
 0x20b   :  { %v426_v28 = vpack.c.bf16 %v424_v25, %v422_v24 }
 0x20c   :  { %v427_v29 = vpack.c.bf16 %v425_v27, %v423_v26 }
 0x20e   :  { %595 = vmatprep.mubr.bf16.mxu0 %v427_v29 }
 0x20f   :  { %596 = vmatmul.mubr.bf16.vlgmr.msra.gmra.mrb[4].mxu0 %v426_v28 }
 0x2e2   :  { %v737_v31 = vpop.f32.mrb[4].mxu0 }
 0x2e3   :  { %v738_v32 = vpop.f32.mrb[5].mxu0 }
 0x2e4   :  { %v739_v34 = vadd.f32 %v738_v32, %v737_v31  ;;  %v740_v35 = vpop.f32.mrb[6].mxu0 }
 0x2e5   :  { %v741_v36 = vpop.f32.mrb[7].mxu0 }
 0x2e6   :  { %v742_v37 = vadd.f32 %v741_v36, %v740_v35  ;;  %v598_v38 = vadd.f32 %v739_v34, %v695_v33 }
 0x2e8   :  { %v607_v39 = vsel %vm606_vm1, %v598_v38, -inf  ;;  %v601_v40 = vadd.f32 %v742_v37, %v695_v33 }
 0x2e9   :  { %609 = vmax.xlane.f32.xlu0 %v607_v39 }
 0x2ea   :  { %v608_v41 = vsel %vm606_vm1, %v601_v40, -inf }
 0x2ed   :  { %611 = vmax.xlane.f32.xlu0 %v608_v41 }
 0x376   :  { %v610_v42 = vpop.xlane.xlu0 %609 }
 0x377   :  { %v613_v43 = vsub.f32 %v607_v39, %v610_v42 }
 0x379   :  { %v615_v44 = vmul.f32 1.442695, %v613_v43 }
 0x37a   :  { %v612_v45 = vpop.xlane.xlu0 %611 }
 0x37b   :  { %823 = vpow2.f32 %v615_v44  ;;  %v614_v46 = vsub.f32 %v608_v41, %v612_v45 }
 0x37d   :  { %v617_v47 = vmul.f32 1.442695, %v614_v46 }
 0x37f   :  { %825 = vpow2.f32 %v617_v47 }
 0x385   :  { %v824_v48 = vpop.eup %823 }
 0x386   :  { %619 = vadd.xlane.f32.xlu1 %v824_v48 }
 0x389   :  { %v826_v49 = vpop.eup %825 }
 0x38a   :  { %621 = vadd.xlane.f32.xlu1 %v826_v49 }
 0x413   :  { %v620_v50 = vpop.xlane.xlu1 %619 }
 0x414   :  { %827 = vrcp.f32 %v620_v50 }
 0x417   :  { %v622_v51 = vpop.xlane.xlu1 %621 }
 0x418   :  { %829 = vrcp.f32 %v622_v51 }
 0x41e   :  { %v828_v52 = vpop.eup %827 }
 0x41f   :  { %v624_v53 = vmul.f32 %v828_v52, %v824_v48 }
 0x421   :  { %v627_v56 = vsel %vm606_vm1, %v624_v53, %v598_v38 }
 0x422   :  { %v830_v54 = vpop.eup %829 }
 0x423   :  { %v626_v55 = vmul.f32 %v830_v54, %v826_v49 }
 0x425   :  { %v628_v57 = vsel %vm606_vm1, %v626_v55, %v601_v40 }
 0x426   :  { %v719_v58 = vpack.c.bf16 %v628_v57, %v627_v56 }
 0x428   :  { %720 = vst [vmem:[#allocation10] sm:$0xff] %v719_v58  }
 0x429   :  { %930 = shalt.err (!%p927_p8)
}
 0x42a   :  { %s931_s11 = scalar_lea.hbm %s1108_s7, 128 }
 0x42b   :  { %p932_p9 = scmp.ne.s32.totalorder %s1108_s7, %s931_s11  ;;  %p935_p10 = scmp.lt.u32.totalorder %s931_s11, %s1108_s7 }
 0x42d   :  { %p937_p11 = pnand %p935_p10, %p932_p9 }
 0x42f   :  { %940 = shalt.err (!%p937_p11)
}
 0x430   :  { %650 = dma.vmem_to_hbm [thread:$0]  %s645_s30, 128, %s1108_s7, [#allocation4], %s955_s3, %s955_s3, %s956_s13  }
 0x431   :  { %947 = dma.done.wait [#allocation4], 128  }
 0x432   :  { %948 = vsyncadd [#allocation4], 4294967168 }
 0x433   :  { %654 = vsyncpa [#allocation3], 1 }
 0x434   :  { %655 = vsyncpa [#allocation6], 1 }
 0x435   :  { %656 = vsyncpa [#allocation9], 1 }
 0x436   :  { %657 = vsyncpa [#allocation4], 1 }

</bundles_post_ra>
